<compile_context>
chip_gen: v7x
topology: tpu7x:2x2x1
jax: 0.10.0
libtpu: 0.0.40
codegen_flags: <defaults>
</compile_context>

<pallas_src>
import math

import jax
import jax.numpy as jnp
from jax import lax
from jax.experimental import pallas as pl
from jax.experimental.pallas import tpu as pltpu


def _masked_linear_kernel(x_ref, w_ref, m_ref, b_ref, o_ref, acc_ref):
    k = pl.program_id(2)

    @pl.when(k == 0)
    def _():
        acc_ref[...] = jnp.zeros_like(acc_ref)

    # Fused mask application on the (tn, tk) weight tile (VPU, hidden under the
    # MXU), then contract the K axis of both operands -> no explicit transpose.
    wm = w_ref[...] * m_ref[...]
    acc_ref[...] += lax.dot_general(
        x_ref[...], wm,
        dimension_numbers=(((1,), (1,)), ((), ())),
        preferred_element_type=jnp.float32,
    )

    @pl.when(k == pl.num_programs(2) - 1)
    def _():
        o_ref[...] = (acc_ref[...] + b_ref[...].astype(jnp.float32)).astype(o_ref.dtype)


def _round_up(x, m):
    return ((x + m - 1) // m) * m


def _tile_and_pad(dim, base):
    """Return (tile, padded_dim). Small dims -> full-extent block (no pad);
    large non-divisible dims -> pad up to a multiple of the base tile."""
    if dim <= base:
        return dim, dim
    if dim % base == 0:
        return base, dim
    return base, _round_up(dim, base)


def masked_linear(x, weight, hard_mask, bias=None, mask=None,
                  *, tm=128, tn=128, tk=512):
    """JAX/Pallas equivalent of Linear_Mask.forward(input, mask)."""
    x = jnp.asarray(x)
    weight = jnp.asarray(weight)
    hard_mask = jnp.asarray(hard_mask)
    eff_mask = hard_mask if mask is None else jnp.asarray(mask) * hard_mask
    eff_mask = eff_mask.astype(weight.dtype)

    N, K = weight.shape
    lead = x.shape[:-1]
    assert x.shape[-1] == K, "input last dim must equal input_size"
    M = math.prod(lead) if lead else 1
    x2 = x.reshape(M, K)

    if bias is None:
        b2 = jnp.zeros((1, N), dtype=x.dtype)
    else:
        b2 = jnp.asarray(bias).reshape(1, N).astype(x.dtype)

    tm, Mp = _tile_and_pad(M, tm)
    tn, Np = _tile_and_pad(N, tn)
    tk, Kp = _tile_and_pad(K, tk)

    # Zero-pad only when a large dim is not tile-divisible (zeros in K
    # contribute nothing to the contraction; extra M rows / N cols are sliced).
    if (Mp, Kp) != (M, K):
        x2 = jnp.pad(x2, ((0, Mp - M), (0, Kp - K)))
    if (Np, Kp) != (N, K):
        weight = jnp.pad(weight, ((0, Np - N), (0, Kp - K)))
        eff_mask = jnp.pad(eff_mask, ((0, Np - N), (0, Kp - K)))
    if Np != N:
        b2 = jnp.pad(b2, ((0, 0), (0, Np - N)))

    grid = (Mp // tm, Np // tn, Kp // tk)

    out = pl.pallas_call(
        _masked_linear_kernel,
        out_shape=jax.ShapeDtypeStruct((Mp, Np), x.dtype),
        grid_spec=pltpu.PrefetchScalarGridSpec(
            num_scalar_prefetch=0,
            grid=grid,
            in_specs=[
                pl.BlockSpec((tm, tk), lambda i, j, k: (i, k)),   # x
                pl.BlockSpec((tn, tk), lambda i, j, k: (j, k)),   # weight
                pl.BlockSpec((tn, tk), lambda i, j, k: (j, k)),   # mask*hard_mask
                pl.BlockSpec((1, tn), lambda i, j, k: (0, j)),    # bias
            ],
            out_specs=pl.BlockSpec((tm, tn), lambda i, j, k: (i, j)),
            scratch_shapes=[pltpu.VMEM((tm, tn), jnp.float32)],
        ),
        compiler_params=pltpu.CompilerParams(
            # parallel M/N lets v7x shard output tiles across both TensorCores;
            # reduction axis K stays "arbitrary" (accumulator carried).
            dimension_semantics=("parallel", "parallel", "arbitrary"),
            vmem_limit_bytes=32 * 1024 * 1024,  # portable across v5e/v6e/v7x
        ),
    )(x2, weight, eff_mask, b2)

    if (Mp, Np) != (M, N):
        out = out[:M, :N]
    return out.reshape(*lead, N)


if __name__ == "__main__":
    key = jax.random.PRNGKey(0)
    k_x, k_w, k_b, k_m, k_h = jax.random.split(key, 5)

    # Small shapes consistent with the module: batch=2, seq=8, input_size=32,
    # output_size=16.  F.linear supports leading dims, so input is 3-D here.
    batch, seq, input_size, output_size = 2, 8, 32, 16

    x = jax.random.normal(k_x, (batch, seq, input_size), dtype=jnp.float32)
    weight = jax.random.normal(k_w, (output_size, input_size), dtype=jnp.float32) * 0.1
    bias = jax.random.normal(k_b, (output_size,), dtype=jnp.float32) * 0.1
    # soft mask (forward arg) and hard mask (module buffer)
    mask = (jax.random.uniform(k_m, (output_size, input_size)) > 0.3).astype(jnp.float32)
    hard_mask = (jax.random.uniform(k_h, (output_size, input_size)) > 0.2).astype(jnp.float32)

    # --- case 1: forward(input, mask) ---
    out1 = masked_linear(x, weight, hard_mask, bias=bias, mask=mask)
    out1 = jax.block_until_ready(out1)
    ref1 = jnp.dot(x, (weight * mask * hard_mask).T,
                   preferred_element_type=jnp.float32) + bias

    # --- case 2: forward(input) (mask=None path) ---
    out2 = masked_linear(x, weight, hard_mask, bias=bias, mask=None)
    out2 = jax.block_until_ready(out2)
    ref2 = jnp.dot(x, (weight * hard_mask).T,
                   preferred_element_type=jnp.float32) + bias

    # --- case 3: no bias ---
    out3 = masked_linear(x, weight, hard_mask, bias=None, mask=mask)
    out3 = jax.block_until_ready(out3)
    ref3 = jnp.dot(x, (weight * mask * hard_mask).T,
                   preferred_element_type=jnp.float32)

    assert out1.shape == (batch, seq, output_size) and out1.dtype == x.dtype
    assert out2.shape == (batch, seq, output_size) and out2.dtype == x.dtype
    assert out3.shape == (batch, seq, output_size) and out3.dtype == x.dtype
    assert jnp.allclose(out1, ref1, rtol=2e-2, atol=2e-2)
    assert jnp.allclose(out2, ref2, rtol=2e-2, atol=2e-2)
    assert jnp.allclose(out3, ref3, rtol=2e-2, atol=2e-2)

    print("KERNEL_OK")
</pallas_src>

<mosaic_0001>
module attributes {stable_mosaic.version = 11 : i64} {
  func.func @_masked_linear_kernel(%arg0: i32, %arg1: i32, %arg2: i32, %arg3: memref<16x32xf32, #tpu.memory_space<vmem>>, %arg4: memref<16x32xf32, #tpu.memory_space<vmem>>, %arg5: memref<16x32xf32, #tpu.memory_space<vmem>>, %arg6: memref<1x16xf32, #tpu.memory_space<vmem>>, %arg7: memref<16x16xf32, #tpu.memory_space<vmem>>, %arg8: memref<16x16xf32, #tpu.memory_space<vmem>>) attributes {dimension_semantics = [#tpu.dimension_semantics<parallel>, #tpu.dimension_semantics<parallel>, #tpu.dimension_semantics<arbitrary>], iteration_bounds = array<i64: 1, 1, 1>, scalar_prefetch = 0 : i64, scratch_operands = 1 : i64, tpu.core_type = #tpu.core_type<tc>, window_params = [{transform_indices = @transform_0, window_bounds = array<i64: 16, 32>}, {transform_indices = @transform_1, window_bounds = array<i64: 16, 32>}, {transform_indices = @transform_2, window_bounds = array<i64: 16, 32>}, {transform_indices = @transform_3, window_bounds = array<i64: 1, 16>}, {transform_indices = @transform_4, window_bounds = array<i64: 16, 16>}]} {
    %c0_i32 = arith.constant 0 : i32
    %0 = arith.cmpi eq, %arg2, %c0_i32 : i32
    %1 = arith.extui %0 : i1 to i32
    %c0_i32_0 = arith.constant 0 : i32
    %2 = arith.cmpi ne, %1, %c0_i32_0 : i32
    scf.if %2 {
      %cst_12 = arith.constant 0.000000e+00 : f32
      %14 = vector.broadcast %cst_12 : f32 to vector<16x16xf32>
      %c0_13 = arith.constant 0 : index
      %c0_14 = arith.constant 0 : index
      %15 = vector.load %arg8[%c0_13, %c0_14] : memref<16x16xf32, #tpu.memory_space<vmem>>, vector<16x16xf32>
      tpu.vector_store %arg8[%c0_13, %c0_14], %14 {strides = array<i32>} : memref<16x16xf32, #tpu.memory_space<vmem>>, vector<16x16xf32>,
    } else {
    }
    %c0 = arith.constant 0 : index
    %c0_1 = arith.constant 0 : index
    %3 = vector.load %arg4[%c0, %c0_1] : memref<16x32xf32, #tpu.memory_space<vmem>>, vector<16x32xf32>
    %c0_2 = arith.constant 0 : index
    %c0_3 = arith.constant 0 : index
    %4 = vector.load %arg5[%c0_2, %c0_3] : memref<16x32xf32, #tpu.memory_space<vmem>>, vector<16x32xf32>
    %5 = arith.mulf %3, %4 : vector<16x32xf32>
    %c0_4 = arith.constant 0 : index
    %c0_5 = arith.constant 0 : index
    %6 = vector.load %arg8[%c0_4, %c0_5] : memref<16x16xf32, #tpu.memory_space<vmem>>, vector<16x16xf32>
    %c0_6 = arith.constant 0 : index
    %c0_7 = arith.constant 0 : index
    %7 = vector.load %arg3[%c0_6, %c0_7] : memref<16x32xf32, #tpu.memory_space<vmem>>, vector<16x32xf32>
    %cst = arith.constant dense<0.000000e+00> : vector<16x16xf32>
    %8 = tpu.matmul %7, %5, %cst {dimension_numbers = #tpu.dot_dimension_numbers<[1], [1], [0], [0], [0, 0, 1, 0], [], []>} : vector<16x32xf32>, vector<16x32xf32>, vector<16x16xf32> -> vector<16x16xf32>
    %9 = arith.addf %6, %8 : vector<16x16xf32>
    %c0_8 = arith.constant 0 : index
    %c0_9 = arith.constant 0 : index
    %10 = vector.load %arg8[%c0_8, %c0_9] : memref<16x16xf32, #tpu.memory_space<vmem>>, vector<16x16xf32>
    tpu.vector_store %arg8[%c0_8, %c0_9], %9 {strides = array<i32>} : memref<16x16xf32, #tpu.memory_space<vmem>>, vector<16x16xf32>,
    %c0_i32_10 = arith.constant 0 : i32
    %11 = arith.cmpi eq, %arg2, %c0_i32_10 : i32
    %12 = arith.extui %11 : i1 to i32
    %c0_i32_11 = arith.constant 0 : i32
    %13 = arith.cmpi ne, %12, %c0_i32_11 : i32
    scf.if %13 {
      %c0_12 = arith.constant 0 : index
      %c0_13 = arith.constant 0 : index
      %14 = vector.load %arg8[%c0_12, %c0_13] : memref<16x16xf32, #tpu.memory_space<vmem>>, vector<16x16xf32>
      %c0_14 = arith.constant 0 : index
      %c0_15 = arith.constant 0 : index
      %15 = vector.load %arg6[%c0_14, %c0_15] : memref<1x16xf32, #tpu.memory_space<vmem>>, vector<1x16xf32>
      %16 = vector.broadcast %15 : vector<1x16xf32> to vector<16x16xf32>
      %17 = arith.addf %14, %16 : vector<16x16xf32>
      %c0_16 = arith.constant 0 : index
      %c0_17 = arith.constant 0 : index
      %18 = vector.load %arg7[%c0_16, %c0_17] : memref<16x16xf32, #tpu.memory_space<vmem>>, vector<16x16xf32>
      tpu.vector_store %arg7[%c0_16, %c0_17], %17 {strides = array<i32>} : memref<16x16xf32, #tpu.memory_space<vmem>>, vector<16x16xf32>,
    } else {
    }
    return
  }
  func.func @transform_0(%arg0: i32, %arg1: i32, %arg2: i32) -> (i32, i32) {
    %c0_i32 = arith.constant 0 : i32
    return %arg0, %arg2 : i32, i32
  }
  func.func @transform_1(%arg0: i32, %arg1: i32, %arg2: i32) -> (i32, i32) {
    %c0_i32 = arith.constant 0 : i32
    return %arg1, %arg2 : i32, i32
  }
  func.func @transform_2(%arg0: i32, %arg1: i32, %arg2: i32) -> (i32, i32) {
    %c0_i32 = arith.constant 0 : i32
    return %arg1, %arg2 : i32, i32
  }
  func.func @transform_3(%arg0: i32, %arg1: i32, %arg2: i32) -> (i32, i32) {
    %c0_i32 = arith.constant 0 : i32
    %c0_i32_0 = arith.constant 0 : i32
    return %c0_i32, %arg1 : i32, i32
  }
  func.func @transform_4(%arg0: i32, %arg1: i32, %arg2: i32) -> (i32, i32) {
    %c0_i32 = arith.constant 0 : i32
    return %arg0, %arg1 : i32, i32
  }
}

</mosaic_0001>

<bundles_post_ra>
// kernel: tpu_custom_call.1
= control target key start
LH: loop header
LB: loop body
LE: loop exit
PB: predicated region body
PF: predicated region fallthrough
CT: control target
= control target key end

     0   :  { %9 = vsyncpa [#allocation4], 0  ;;  %s434_s0 = inlined_call_operand.hbm [shape: f32[16,32], index: 0, kind: input, shape index: {}]   ;;  %s435_s1 = inlined_call_operand.hbm [shape: f32[16,32], index: 1, kind: input, shape index: {}]   ;;  %s436_s2 = inlined_call_operand.hbm [shape: f32[16,32], index: 2, kind: input, shape index: {}]   ;;  %s437_s3 = inlined_call_operand.vmem [shape: f32[1,16], index: 3, kind: input, shape index: {}]   ;;  %s438_s4 = inlined_call_operand.hbm [shape: f32[16,16], index: 4, kind: output, shape index: {}]  }
   0x1   :  { %10 = vsyncpa [#allocation7], 0 }
   0x2   :  { %11 = vsyncpa [#allocation5], 0  ;;  %s326_s15 = smov [#allocation6]   ;;  %s327_s17 = smov [#allocation3]  }
   0x3   :  { %s29_s16 = sshll.u32 %s326_s15, 4  ;;  %s17_s18 = sshll.u32 %s327_s17, 4  ;;  %s30_s16 = int_to_ptr.vmem [resolvable:$true] %s29_s16  ;;  %s358_s18 = int_to_ptr.vmem [resolvable:$true] %s17_s18 }
   0x4   :  { %s232_s21 = scalar_lea.hbm %s435_s1, 256 }
   0x5   :  { %p233_p0 = scmp.ne.s32.totalorder %s435_s1, %s232_s21  ;;  %p236_p1 = scmp.lt.u32.totalorder %s232_s21, %s435_s1 }
   0x7   :  { %p238_p2 = pnand %p236_p1, %p233_p0 }
   0x9   :  { %241 = shalt.err (!%p238_p2)
}
   0xa   :  { %s242_s26 = scalar_lea.vmem %s30_s16, 256  ;;  %p247_p4 = scmp.lt.s32.totalorder %s30_s16, %s30_s16 }
   0xb   :  { %p243_p3 = scmp.ne.s32.totalorder %s30_s16, %s242_s26  ;;  %p248_p5 = scmp.lt.s32.totalorder %s242_s26, %s242_s26 }
   0xd   :  { %p249_p6 = por %p248_p5, %p247_p4 }
   0xf   :  { %p250_p7 = pnand %p249_p6, %p243_p3 }
  0x11   :  { %253 = shalt.err (!%p250_p7)
}
  0x12   :  { %s328_s27 = smov 128   ;;  %s329_s28 = smov 8  }
  0x13   :  { %35 = dma.hbm_to_vmem [thread:$0]  %s435_s1, 256, %s30_s16, [#allocation7], %s328_s27, %s328_s27, %s329_s28  }
  0x14   :  { %s254_s7 = scalar_lea.hbm %s434_s0, 256 }
  0x15   :  { %p255_p8 = scmp.ne.s32.totalorder %s434_s0, %s254_s7  ;;  %p258_p9 = scmp.lt.u32.totalorder %s254_s7, %s434_s0 }
  0x17   :  { %p260_p10 = pnand %p258_p9, %p255_p8 }
  0x19   :  { %263 = shalt.err (!%p260_p10)
}
  0x1a   :  { %s264_s12 = scalar_lea.vmem %s358_s18, 256  ;;  %p269_p12 = scmp.lt.s32.totalorder %s358_s18, %s358_s18 }
  0x1b   :  { %p265_p11 = scmp.ne.s32.totalorder %s358_s18, %s264_s12  ;;  %p270_p13 = scmp.lt.s32.totalorder %s264_s12, %s264_s12 }
  0x1d   :  { %p271_p0 = por %p270_p13, %p269_p12 }
  0x1f   :  { %p272_p1 = pnand %p271_p0, %p265_p11 }
  0x21   :  { %275 = shalt.err (!%p272_p1)
}
  0x22   :  { %23 = dma.hbm_to_vmem [thread:$0]  %s434_s0, 256, %s358_s18, [#allocation4], %s328_s27, %s328_s27, %s329_s28  }
  0x23   :  { %s330_s14 = smov [#allocation8]   ;;  %s276_s19 = scalar_lea.hbm %s436_s2, 256 }
  0x24   :  { %s41_s15 = sshll.u32 %s330_s14, 4  ;;  %p277_p2 = scmp.ne.s32.totalorder %s436_s2, %s276_s19  ;;  %s42_s15 = int_to_ptr.vmem [resolvable:$true] %s41_s15 }
  0x25   :  { %p280_p3 = scmp.lt.u32.totalorder %s276_s19, %s436_s2 }
  0x27   :  { %p282_p4 = pnand %p280_p3, %p277_p2 }
  0x29   :  { %285 = shalt.err (!%p282_p4)
}
  0x2a   :  { %s286_s24 = scalar_lea.vmem %s42_s15, 256  ;;  %p291_p6 = scmp.lt.s32.totalorder %s42_s15, %s42_s15 }
  0x2b   :  { %p287_p5 = scmp.ne.s32.totalorder %s42_s15, %s286_s24  ;;  %p292_p7 = scmp.lt.s32.totalorder %s286_s24, %s286_s24 }
  0x2d   :  { %p293_p8 = por %p292_p7, %p291_p6 }
  0x2f   :  { %p294_p9 = pnand %p293_p8, %p287_p5 }
  0x31   :  { %297 = shalt.err (!%p294_p9)
}
  0x32   :  { %47 = dma.hbm_to_vmem [thread:$0]  %s436_s2, 256, %s42_s15, [#allocation7], %s328_s27, %s328_s27, %s329_s28  }
  0x33   :  { %320 = dma.done.wait [#allocation4], 256  }
  0x34   :  { %321 = vsyncadd [#allocation4], 4294967040 }
  0x35   :  { %322 = dma.done.wait [#allocation7], 512  }
  0x36   :  { %323 = vsyncadd [#allocation7], 4294966784  ;;  %vm63_vm0 = vcmask 130048   ;;  %v331_v0 = vmov 0.0   ;;  %v66_v1 = vld [vmem:[#allocation6] sm:$0xff]  ;;  %v67_v2 = vld [vmem:[#allocation6 + $0x8] sm:$0xff] }
  0x37   :  { %65 = vst.msk [vmem:[#allocation2 + $0x8] sm:$0xff] %vm63_vm0, %v331_v0  ;;  %64 = vst.msk [vmem:[#allocation2] sm:$0xff] %vm63_vm0, %v331_v0  ;;  %v68_v3 = vld [vmem:[#allocation8] sm:$0xff]  ;;  %vm76_vm1 = vcmask 261120   ;;  %v69_v4 = vld [vmem:[#allocation8 + $0x8] sm:$0xff]  ;;  %s332_s26 = smov [#allocation9]  }
  0x38   :  { %v70_v5 = vmul.f32 %v68_v3, %v66_v1  ;;  %v74_v6 = vld [vmem:[#allocation3] sm:$0xff]  ;;  %v71_v7 = vmul.f32 %v69_v4, %v67_v2  ;;  %vm220_vm2 = vmpackc.low %vm76_vm1, %vm76_vm1  ;;  %v75_v9 = vld [vmem:[#allocation3 + $0x8] sm:$0xff]  ;;  %s190_s29 = sshll.u32 %s332_s26, 4  ;;  %s191_s29 = int_to_ptr.vmem [resolvable:$true] %s190_s29 }
  0x39   :  { %216 = vmatprep.mubr.msk.f32.mxu0 %vm76_vm1, %v74_v6  ;;  %v207_v16 = vld [vmem:[%s437_s3] ss:$0 sm:$0xff]  ;;  %s298_s30 = scalar_lea.vmem %s191_s29, 256  ;;  %p303_p11 = scmp.lt.s32.totalorder %s191_s29, %s191_s29 }
  0x3a   :  { %v219_v8 = vpack.c.bf16 %v71_v7, %v70_v5  ;;  %p299_p10 = scmp.ne.s32.totalorder %s191_s29, %s298_s30  ;;  %p304_p12 = scmp.lt.s32.totalorder %s298_s30, %s298_s30 }
  0x3c   :  { %221 = vmatprep.subr.msk.bf16.mxu0 %vm220_vm2, %v219_v8  ;;  %p305_p13 = por %p304_p12, %p303_p11 }
  0x3d   :  { %224 = vmatpush3.bf16.xpose.msk.msra.mxu0 %vm220_vm2, %v219_v8 }
  0x3e   :  { %v73_v10 = vld [vmem:[#allocation2 + $0x8] sm:$0xff]  ;;  %v72_v11 = vld [vmem:[#allocation2] sm:$0xff]  ;;  %p306_p0 = pnand %p305_p13, %p299_p10 }
  0x44   :  { %217 = vmatmul.mubr.msk.f32.vlgmr.msra.gmra.mrb[0].mxu0 %vm76_vm1, %v75_v9 }
 0x117   :  { %v218_v12 = vpop.f32.mrb[0].mxu0 }
 0x118   :  { %v165_v13 = vadd.f32 %v218_v12, %v73_v10  ;;  %v155_v14 = vpop.f32.mrb[1].mxu0 }
 0x119   :  { %v164_v15 = vadd.f32 %v155_v14, %v72_v11 }
 0x11a   :  { %168 = vst.msk [vmem:[#allocation2 + $0x8] sm:$0xff] %vm63_vm0, %v165_v13 }
 0x11b   :  { %167 = vst.msk [vmem:[#allocation2] sm:$0xff] %vm63_vm0, %v164_v15 }
 0x121   :  { %v173_v17 = vld [vmem:[#allocation2 + $0x8] sm:$0xff] }
 0x122   :  { %v172_v18 = vld [vmem:[#allocation2] sm:$0xff]  ;;  %v182_v19 = vadd.f32 %v207_v16, %v173_v17 }
 0x123   :  { %v181_v20 = vadd.f32 %v207_v16, %v172_v18 }
 0x124   :  { %184 = vst.msk [vmem:[#allocation9 + $0x8] sm:$0xff] %vm63_vm0, %v182_v19 }
 0x125   :  { %183 = vst.msk [vmem:[#allocation9] sm:$0xff] %vm63_vm0, %v181_v20 }
 0x126   :  { %309 = shalt.err (!%p306_p0)
}
 0x127   :  { %s310_s6 = scalar_lea.hbm %s438_s4, 256 }
 0x128   :  { %p311_p1 = scmp.ne.s32.totalorder %s438_s4, %s310_s6  ;;  %p314_p2 = scmp.lt.u32.totalorder %s310_s6, %s438_s4 }
 0x12a   :  { %p316_p3 = pnand %p314_p2, %p311_p1 }
 0x12c   :  { %319 = shalt.err (!%p316_p3)
}
 0x12d   :  { %196 = dma.vmem_to_hbm [thread:$0]  %s191_s29, 256, %s438_s4, [#allocation5], %s328_s27, %s328_s27, %s329_s28  }
 0x12e   :  { %324 = dma.done.wait [#allocation5], 256  }
 0x12f   :  { %325 = vsyncadd [#allocation5], 4294967040 }
 0x130   :  { %200 = vsyncpa [#allocation4], 1 }
 0x131   :  { %201 = vsyncpa [#allocation7], 1 }
 0x132   :  { %202 = vsyncpa [#allocation5], 1 }

</bundles_post_ra>
